<compile_context>
chip_gen: v7x
topology: tpu7x:2x2x1
jax: 0.10.0
libtpu: 0.0.40
codegen_flags: <defaults>
</compile_context>

<pallas_src>
import math

import jax
import jax.numpy as jnp
from jax.experimental import pallas as pl
from jax.experimental.pallas import tpu as pltpu


def _round_up(a: int, m: int) -> int:
    return ((a + m - 1) // m) * m


def _mlp_fused_kernel(*refs):
    """refs = (xT_ref, w0, b0, w1, b1, ..., w_{L-1}, b_{L-1}, oT_ref).

    xT_ref: (D0, TILE_N)      w_i: (D_{i+1}, D_i)   b_i: (D_{i+1}, 1)
    oT_ref: (D_L, TILE_N)
    Batch on lanes (dense), features on sublanes.  All layers unrolled; the
    activation `h` never leaves VMEM/vregs.
    """
    xT_ref = refs[0]
    oT_ref = refs[-1]
    wb = refs[1:-1]
    n_layers = len(wb) // 2

    h = xT_ref[...]
    for i in range(n_layers):
        w = wb[2 * i][...]
        b = wb[2 * i + 1][...]          # read once per tile (loop is unrolled)
        h = jnp.dot(
            w, h,
            preferred_element_type=jnp.float32,
            precision=jax.lax.Precision.HIGHEST,
        ) + b                            # b is (d_out, 1) -> broadcasts over lanes
        if i < n_layers - 1:
            h = jnp.tanh(h)              # EUP; no activation after final Linear
    oT_ref[...] = h.astype(oT_ref.dtype)


def mlp_forward(x, params, *, tile_n=8192):
    """Fused MLP forward. x: [N, layer_sizes[0]] -> [N, layer_sizes[-1]].

    params: list of (W[d_out, d_in], b[d_out, 1]) in torch-native layout.
    Internally the batch is placed on the lane axis ([D, N] layout) for
    lane-dense compute and unmasked stores.
    """
    n, d_in = x.shape
    d_out = params[-1][0].shape[0]

    # Lane-axis tile: multiple of 128, no larger than needed for this batch.
    tn = max(128, (min(tile_n, _round_up(n, 128)) // 128) * 128)
    n_pad = _round_up(n, tn)
    grid = (n_pad // tn,)

    # Transpose once (batch -> lanes) and zero-pad so no block is lane-masked.
    xT = jnp.transpose(x)                         # (d_in, n)
    if n_pad != n:
        xT = jnp.pad(xT, ((0, 0), (0, n_pad - n)))

    in_specs = [pl.BlockSpec((d_in, tn), lambda i: (0, i))]
    flat_params = []
    for (w, b) in params:
        # Constant index_map -> weights/biases stay resident in VMEM across
        # all grid steps (no re-DMA per tile).
        in_specs.append(pl.BlockSpec(w.shape, lambda i: (0, 0)))
        in_specs.append(pl.BlockSpec(b.shape, lambda i: (0, 0)))
        flat_params.extend([w, b])

    out_specs = pl.BlockSpec((d_out, tn), lambda i: (0, i))

    # Advisory cost estimate for XLA's scheduler.
    dims = [d_in] + [w.shape[0] for (w, _) in params]
    flops = 2 * n_pad * sum(a * b for a, b in zip(dims[:-1], dims[1:]))
    transcendentals = n_pad * sum(dims[1:-1])
    param_bytes = sum(w.size + b.size for (w, b) in params) * 4
    bytes_accessed = 4 * n_pad * (d_in + d_out) + param_bytes

    oT = pl.pallas_call(
        _mlp_fused_kernel,
        out_shape=jax.ShapeDtypeStruct((d_out, n_pad), x.dtype),
        grid=grid,
        in_specs=in_specs,
        out_specs=out_specs,
        compiler_params=pltpu.CompilerParams(
            # Batch tiles are independent -> "parallel" enables full
            # pipelining and lets v7x shard the grid across both TensorCores.
            dimension_semantics=("parallel",),
        ),
        cost_estimate=pl.CostEstimate(
            flops=flops,
            transcendentals=transcendentals,
            bytes_accessed=bytes_accessed,
        ),
    )(xT, *flat_params)

    # Back to caller layout, dropping the batch padding.
    return jnp.transpose(oT[:, :n])


def init_mlp_params(key, layer_sizes):
    """Xavier-uniform weights (nn.init.xavier_uniform_), zero biases.

    Returns list of (W[d_out, d_in], b[d_out, 1]) — torch-native weight layout
    (the kernel computes W @ x_T directly, so no transpose is needed).
    """
    params = []
    for d_in, d_out in zip(layer_sizes[:-1], layer_sizes[1:]):
        key, sub = jax.random.split(key)
        bound = math.sqrt(6.0 / (d_in + d_out))
        w = jax.random.uniform(
            sub, (d_out, d_in), minval=-bound, maxval=bound, dtype=jnp.float32
        )
        b = jnp.zeros((d_out, 1), dtype=jnp.float32)
        params.append((w, b))
    return params


def mlp_reference(x, params):
    """Pure-JAX reference for verification (same HIGHEST matmul precision)."""
    n_layers = len(params)
    for i, (w, b) in enumerate(params):
        x = jnp.dot(x, w.T, precision=jax.lax.Precision.HIGHEST) + b[:, 0]
        if i < n_layers - 1:
            x = jnp.tanh(x)
    return x


# TODO(synk): dropout > 0.0 (training mode) not implemented; module defaults
# to dropout=0.0. Activation is fixed to tanh (activation_layer=nn.Tanh).


if __name__ == "__main__":
    key = jax.random.PRNGKey(0)
    layer_sizes = [4, 32, 32, 2]   # e.g. PINN: (x, y, t, nu) -> hidden -> (u, v)

    k_params, k_x1, k_x2 = jax.random.split(key, 3)
    params = init_mlp_params(k_params, layer_sizes)

    # Small batch: single tile, exercises the batch-padding (64 -> 128) path.
    x_small = jax.random.normal(k_x1, (64, layer_sizes[0]), dtype=jnp.float32)
    out_small = jax.block_until_ready(mlp_forward(x_small, params))
    ref_small = mlp_reference(x_small, params)
    assert out_small.shape == (64, layer_sizes[-1]), out_small.shape
    assert jnp.allclose(out_small, ref_small, atol=1e-5, rtol=1e-5), \
        "mismatch vs reference (small batch)"

    # Larger, non-multiple-of-tile batch with tile_n=128: multi-step grid,
    # weight-resident VMEM path, padded tail tile.
    x_big = jax.random.normal(k_x2, (300, layer_sizes[0]), dtype=jnp.float32)
    out_big = jax.block_until_ready(mlp_forward(x_big, params, tile_n=128))
    ref_big = mlp_reference(x_big, params)
    assert out_big.shape == (300, layer_sizes[-1]), out_big.shape
    assert jnp.allclose(out_big, ref_big, atol=1e-5, rtol=1e-5), \
        "mismatch vs reference (tiled batch)"

    print("KERNEL_OK")
</pallas_src>

<mosaic_0001>
module attributes {stable_mosaic.version = 11 : i64} {
  func.func @_mlp_fused_kernel(%arg0: i32, %arg1: memref<4x128xf32, #tpu.memory_space<vmem>>, %arg2: memref<32x4xf32, #tpu.memory_space<vmem>>, %arg3: memref<32x1xf32, #tpu.memory_space<vmem>>, %arg4: memref<32x32xf32, #tpu.memory_space<vmem>>, %arg5: memref<32x1xf32, #tpu.memory_space<vmem>>, %arg6: memref<2x32xf32, #tpu.memory_space<vmem>>, %arg7: memref<2x1xf32, #tpu.memory_space<vmem>>, %arg8: memref<2x128xf32, #tpu.memory_space<vmem>>) attributes {dimension_semantics = [#tpu.dimension_semantics<parallel>], iteration_bounds = array<i64: 1>, scalar_prefetch = 0 : i64, scratch_operands = 0 : i64, tpu.core_type = #tpu.core_type<tc>, window_params = [{transform_indices = @transform_0, window_bounds = array<i64: 4, 128>}, {pipeline_mode = #tpu.pipeline_mode<synchronous>, transform_indices = @transform_1, window_bounds = array<i64: 32, 4>}, {pipeline_mode = #tpu.pipeline_mode<synchronous>, transform_indices = @transform_2, window_bounds = array<i64: 32, 1>}, {pipeline_mode = #tpu.pipeline_mode<synchronous>, transform_indices = @transform_3, window_bounds = array<i64: 32, 32>}, {pipeline_mode = #tpu.pipeline_mode<synchronous>, transform_indices = @transform_4, window_bounds = array<i64: 32, 1>}, {pipeline_mode = #tpu.pipeline_mode<synchronous>, transform_indices = @transform_5, window_bounds = array<i64: 2, 32>}, {pipeline_mode = #tpu.pipeline_mode<synchronous>, transform_indices = @transform_6, window_bounds = array<i64: 2, 1>}, {transform_indices = @transform_7, window_bounds = array<i64: 2, 128>}]} {
    %c0 = arith.constant 0 : index
    %c0_0 = arith.constant 0 : index
    %0 = vector.load %arg1[%c0, %c0_0] : memref<4x128xf32, #tpu.memory_space<vmem>>, vector<4x128xf32>
    %c0_1 = arith.constant 0 : index
    %c0_2 = arith.constant 0 : index
    %1 = vector.load %arg2[%c0_1, %c0_2] : memref<32x4xf32, #tpu.memory_space<vmem>>, vector<32x4xf32>
    %c0_3 = arith.constant 0 : index
    %c0_4 = arith.constant 0 : index
    %2 = vector.load %arg3[%c0_3, %c0_4] : memref<32x1xf32, #tpu.memory_space<vmem>>, vector<32x1xf32>
    %cst = arith.constant dense<0.000000e+00> : vector<32x128xf32>
    %3 = tpu.matmul %1, %0, %cst {dimension_numbers = #tpu.dot_dimension_numbers<[1], [0], [0], [1], [0, 0, 1, 1], [], []>, precision = #tpu.contract_precision<fp32>} : vector<32x4xf32>, vector<4x128xf32>, vector<32x128xf32> -> vector<32x128xf32>
    %4 = vector.broadcast %2 : vector<32x1xf32> to vector<32x128xf32>
    %5 = arith.addf %3, %4 : vector<32x128xf32>
    %6 = math.tanh %5 : vector<32x128xf32>
    %c0_5 = arith.constant 0 : index
    %c0_6 = arith.constant 0 : index
    %7 = vector.load %arg4[%c0_5, %c0_6] : memref<32x32xf32, #tpu.memory_space<vmem>>, vector<32x32xf32>
    %c0_7 = arith.constant 0 : index
    %c0_8 = arith.constant 0 : index
    %8 = vector.load %arg5[%c0_7, %c0_8] : memref<32x1xf32, #tpu.memory_space<vmem>>, vector<32x1xf32>
    %cst_9 = arith.constant dense<0.000000e+00> : vector<32x128xf32>
    %9 = tpu.matmul %7, %6, %cst_9 {dimension_numbers = #tpu.dot_dimension_numbers<[1], [0], [0], [1], [0, 0, 1, 1], [], []>, precision = #tpu.contract_precision<fp32>} : vector<32x32xf32>, vector<32x128xf32>, vector<32x128xf32> -> vector<32x128xf32>
    %10 = vector.broadcast %8 : vector<32x1xf32> to vector<32x128xf32>
    %11 = arith.addf %9, %10 : vector<32x128xf32>
    %12 = math.tanh %11 : vector<32x128xf32>
    %c0_10 = arith.constant 0 : index
    %c0_11 = arith.constant 0 : index
    %13 = vector.load %arg6[%c0_10, %c0_11] : memref<2x32xf32, #tpu.memory_space<vmem>>, vector<2x32xf32>
    %c0_12 = arith.constant 0 : index
    %c0_13 = arith.constant 0 : index
    %14 = vector.load %arg7[%c0_12, %c0_13] : memref<2x1xf32, #tpu.memory_space<vmem>>, vector<2x1xf32>
    %cst_14 = arith.constant dense<0.000000e+00> : vector<2x128xf32>
    %15 = tpu.matmul %13, %12, %cst_14 {dimension_numbers = #tpu.dot_dimension_numbers<[1], [0], [0], [1], [0, 0, 1, 1], [], []>, precision = #tpu.contract_precision<fp32>} : vector<2x32xf32>, vector<32x128xf32>, vector<2x128xf32> -> vector<2x128xf32>
    %16 = vector.broadcast %14 : vector<2x1xf32> to vector<2x128xf32>
    %17 = arith.addf %15, %16 : vector<2x128xf32>
    %c0_15 = arith.constant 0 : index
    %c0_16 = arith.constant 0 : index
    %18 = vector.load %arg8[%c0_15, %c0_16] : memref<2x128xf32, #tpu.memory_space<vmem>>, vector<2x128xf32>
    tpu.vector_store %arg8[%c0_15, %c0_16], %17 {strides = array<i32>} : memref<2x128xf32, #tpu.memory_space<vmem>>, vector<2x128xf32>,
    return
  }
  func.func @transform_0(%arg0: i32) -> (i32, i32) {
    %c0_i32 = arith.constant 0 : i32
    %c0_i32_0 = arith.constant 0 : i32
    return %c0_i32, %arg0 : i32, i32
  }
  func.func @transform_1(%arg0: i32) -> (i32, i32) {
    %c0_i32 = arith.constant 0 : i32
    %c0_i32_0 = arith.constant 0 : i32
    %c0_i32_1 = arith.constant 0 : i32
    return %c0_i32, %c0_i32_0 : i32, i32
  }
  func.func @transform_2(%arg0: i32) -> (i32, i32) {
    %c0_i32 = arith.constant 0 : i32
    %c0_i32_0 = arith.constant 0 : i32
    %c0_i32_1 = arith.constant 0 : i32
    return %c0_i32, %c0_i32_0 : i32, i32
  }
  func.func @transform_3(%arg0: i32) -> (i32, i32) {
    %c0_i32 = arith.constant 0 : i32
    %c0_i32_0 = arith.constant 0 : i32
    %c0_i32_1 = arith.constant 0 : i32
    return %c0_i32, %c0_i32_0 : i32, i32
  }
  func.func @transform_4(%arg0: i32) -> (i32, i32) {
    %c0_i32 = arith.constant 0 : i32
    %c0_i32_0 = arith.constant 0 : i32
    %c0_i32_1 = arith.constant 0 : i32
    return %c0_i32, %c0_i32_0 : i32, i32
  }
  func.func @transform_5(%arg0: i32) -> (i32, i32) {
    %c0_i32 = arith.constant 0 : i32
    %c0_i32_0 = arith.constant 0 : i32
    %c0_i32_1 = arith.constant 0 : i32
    return %c0_i32, %c0_i32_0 : i32, i32
  }
  func.func @transform_6(%arg0: i32) -> (i32, i32) {
    %c0_i32 = arith.constant 0 : i32
    %c0_i32_0 = arith.constant 0 : i32
    %c0_i32_1 = arith.constant 0 : i32
    return %c0_i32, %c0_i32_0 : i32, i32
  }
  func.func @transform_7(%arg0: i32) -> (i32, i32) {
    %c0_i32 = arith.constant 0 : i32
    %c0_i32_0 = arith.constant 0 : i32
    return %c0_i32, %arg0 : i32, i32
  }
}

</mosaic_0001>

<bundles_post_ra>
// kernel: tpu_custom_call.1
= control target key start
LH: loop header
LB: loop body
LE: loop exit
PB: predicated region body
PF: predicated region fallthrough
CT: control target
= control target key end

     0   :  { %vm69_vm0 = vcmask 1043456   ;;  %vm56_vm1 = vcmask 31744   ;;  %v2316_v12 = vmov 0   ;;  %s2566_s0 = inlined_call_operand.vmem [shape: f32[4,128], index: 0, kind: input, shape index: {}]   ;;  %s2567_s1 = inlined_call_operand.vmem [shape: f32[32,4], index: 1, kind: input, shape index: {}]   ;;  %s2568_s2 = inlined_call_operand.vmem [shape: f32[32,1], index: 2, kind: input, shape index: {}]   ;;  %s2569_s3 = inlined_call_operand.vmem [shape: f32[32,32], index: 3, kind: input, shape index: {}]   ;;  %s2570_s4 = inlined_call_operand.vmem [shape: f32[32,1], index: 4, kind: input, shape index: {}]   ;;  %s2571_s5 = inlined_call_operand.vmem [shape: f32[2,32], index: 5, kind: input, shape index: {}]   ;;  %s2572_s6 = inlined_call_operand.vmem [shape: f32[2,1], index: 6, kind: input, shape index: {}]   ;;  %s2573_s7 = inlined_call_operand.hbm [shape: f32[2,128], index: 7, kind: output, shape index: {}]  }
   0x1   :  { %v27_v0 = vld [vmem:[%s2566_s0] sm:$0xf]  ;;  %v29_v2 = vld [vmem:[%s2567_s1 + $0x8] sm:$0xff]  ;;  %v30_v6 = vld [vmem:[%s2567_s1 + $0x10] sm:$0xff]  ;;  %2274 = vset.pattern.permute.xlu0 %v2316_v12  ;;  %2275 = vset.pattern.permute.xlu1 %v2316_v12 }
   0x2   :  { %v28_v1 = vld [vmem:[%s2567_s1] sm:$0xff]  ;;  %v71_v3 = vsel %vm69_vm0, %v27_v0, 0  ;;  %v61_v5 = vsel %vm56_vm1, %v29_v2, 0  ;;  %v31_v7 = vld [vmem:[%s2567_s1 + $0x18] sm:$0xff]  ;;  %v64_v11 = vsel %vm56_vm1, %v30_v6, 0  ;;  %v34_v16 = vld [vmem:[%s2568_s2 + $0x10] sm:$0xff] }
   0x3   :  { %v58_v4 = vsel %vm56_vm1, %v28_v1, 0  ;;  %v2378_v8 = vand.u32 4294901760, %v71_v3  ;;  %v2382_v10 = vand.u32 4294901760, %v61_v5  ;;  %v32_v13 = vld [vmem:[%s2568_s2] sm:$0xff]  ;;  %v2388_v14 = vand.u32 4294901760, %v64_v11  ;;  %v33_v21 = vld [vmem:[%s2568_s2 + $0x8] sm:$0xff]  ;;  %48 = vperm.xlu1 %2275, %v34_v16  }
   0x4   :  { %v2380_v9 = vand.u32 4294901760, %v58_v4  ;;  %v67_v15 = vsel %vm56_vm1, %v31_v7, 0  ;;  %38 = vperm.xlu0 %2274, %v32_v13  }
   0x5   :  { %v181_v17 = vsub.f32 %v71_v3, %v2378_v8  ;;  %v150_v19 = vsub.f32 %v61_v5, %v2382_v10  ;;  %1929 = vmatprep.subr.mxu1 %v2378_v8  ;;  %v2398_v20 = vand.u32 4294901760, %v67_v15  ;;  %v160_v22 = vsub.f32 %v64_v11, %v2388_v14 }
   0x6   :  { %v140_v18 = vsub.f32 %v58_v4, %v2380_v9  ;;  %1930 = vmatpush3.msra.mxu1 %v2378_v8 }
   0x7   :  { %12 = vsyncpa [#allocation3], 0  ;;  %1945 = vmatprep.subr.mxu0 %v181_v17  ;;  %v170_v24 = vsub.f32 %v67_v15, %v2398_v20  ;;  %v151_v25 = vand.u32 4294901760, %v150_v19  ;;  %v182_v26 = vand.u32 4294901760, %v181_v17  ;;  %v161_v27 = vand.u32 4294901760, %v160_v22  ;;  %v35_v28 = vld [vmem:[%s2568_s2 + $0x18] sm:$0xff] }
   0x8   :  { %1947 = vmatprep.mubr.f32.mxu0 %v140_v18  ;;  %v141_v23 = vand.u32 4294901760, %v140_v18  ;;  %1946 = vmatpush3.msra.mxu0 %v181_v17  ;;  %v656_v33 = vld [vmem:[%s2570_s4] sm:$0xff]  ;;  %v658_v40 = vld [vmem:[%s2570_s4 + $0x10] sm:$0xff]  ;;  %v657_v42 = vld [vmem:[%s2570_s4 + $0x8] sm:$0xff]  ;;  %vm680_vm2 = vcmask 261120   ;;  %vm2318_vm3 = vmmov 0  }
   0x9   :  { %43 = vperm.xlu0 %2274, %v33_v21   ;;  %1948 = vmatmul.mubr.f32.vlgmr.msra.gmra.mrb[0].mxu0 %v150_v19  ;;  %v152_v30 = vsub.f32 %v150_v19, %v151_v25  ;;  %v171_v31 = vand.u32 4294901760, %v170_v24  ;;  %v183_v32 = vsub.f32 %v181_v17, %v182_v26  ;;  %v162_v34 = vsub.f32 %v160_v22, %v161_v27  ;;  %v1312_v43 = vld [vmem:[%s2572_s6] sm:$0x3]  ;;  %v659_v44 = vld [vmem:[%s2570_s4 + $0x18] sm:$0xff]  ;;  %v653_v62 = vld [vmem:[%s2569_s3 + $0x8] sm:$0xff] }
   0xa   :  { %1953 = vmatprep.subr.mxu0 %v2378_v8  ;;  %v142_v29 = vsub.f32 %v140_v18, %v141_v23  ;;  %1950 = vmatprep.mubr.f32.mxu0 %v160_v22  ;;  %v652_v45 = vld [vmem:[%s2569_s3] sm:$0xff]  ;;  %v654_v3 = vld [vmem:[%s2569_s3 + $0x10] sm:$0xff]  ;;  %v685_v5 = vsel %vm680_vm2, %v653_v62, 0  ;;  %v655_v11 = vld [vmem:[%s2569_s3 + $0x18] sm:$0xff] }
   0xb   :  { %1954 = vmatpush3.msra.mxu0 %v2378_v8  ;;  %v153_v36 = vand.u32 4294901760, %v152_v30  ;;  %v172_v37 = vsub.f32 %v170_v24, %v171_v31  ;;  %v184_v38 = vand.u32 4294901760, %v183_v32  ;;  %53 = vperm.xlu1 %2275, %v35_v28   ;;  %v163_v39 = vand.u32 4294901760, %v162_v34 }
   0xc   :  { %v143_v35 = vand.u32 4294901760, %v142_v29  ;;  %1961 = vmatprep.subr.mxu0 %v182_v26  ;;  %v682_v46 = vsel %vm680_vm2, %v652_v45, 0  ;;  %v2464_v13 = vand.u32 4294901760, %v685_v5  ;;  %v691_v15 = vsel %vm680_vm2, %v655_v11, 0 }
   0xd   :  { %662 = vperm.xlu0 %2274, %v656_v33   ;;  %1951 = vmatmul.mubr.f32.gmra.mrb[2].mxu0 %v170_v24  ;;  %v173_v41 = vand.u32 4294901760, %v172_v37  ;;  %v2444_v47 = vand.u32 4294901760, %v682_v46  ;;  %v2472_v17 = vand.u32 4294901760, %v691_v15 }
   0xe   :  { %1931 = vmatprep.mubr.f32.mxu1 %v143_v35  ;;  %1955 = vmatprep.mubr.f32.mxu0 %v141_v23  ;;  %v2470_v16 = vsub.f32 %v685_v5, %v2464_v13 }
   0xf   :  { %1932 = vmatmul.mubr.f32.vlgmr.msra.gmra.mrb[0].mxu1 %v153_v36  ;;  %1937 = vmatprep.subr.mxu1 %v184_v38  ;;  %v2447_v48 = vsub.f32 %v682_v46, %v2444_v47  ;;  %v2479_v24 = vsub.f32 %v691_v15, %v2472_v17 }
  0x10   :  { %1934 = vmatprep.mubr.f32.mxu1 %v163_v39  ;;  %1938 = vmatpush3.msra.mxu1 %v184_v38  ;;  %v774_v22 = vand.u32 4294901760, %v2470_v16 }
  0x11   :  { %672 = vperm.xlu0 %2274, %v658_v40   ;;  %1956 = vmatmul.mubr.f32.vlgmr.msra.gmra.mrb[0].mxu0 %v151_v25  ;;  %v764_v49 = vand.u32 4294901760, %v2447_v48  ;;  %v794_v36 = vand.u32 4294901760, %v2479_v24 }
  0x12   :  { %667 = vperm.xlu1 %2275, %v657_v42   ;;  %1962 = vmatpush3.msra.mxu0 %v182_v26  ;;  %v775_v32 = vsub.f32 %v2470_v16, %v774_v22 }
  0x13   :  { %1935 = vmatmul.mubr.f32.gmra.mrb[2].mxu1 %v173_v41  ;;  %1958 = vmatprep.mubr.f32.mxu0 %v161_v27  ;;  %v765_v50 = vsub.f32 %v2447_v48, %v764_v49 }
  0x14   :  { %1939 = vmatprep.mubr.f32.mxu1 %v2380_v9  ;;  %1969 = vmatprep.subr.mxu0 %v2378_v8  ;;  %v776_v45 = vand.u32 4294901760, %v775_v32 }
  0x15   :  { %1315 = vperm.xlu0 %2274, %v1312_v43   ;;  %1959 = vmatmul.mubr.f32.gmra.mrb[2].mxu0 %v171_v31  ;;  %v766_v51 = vand.u32 4294901760, %v765_v50 }
  0x16   :  { %677 = vperm.xlu1 %2275, %v659_v44   ;;  %1963 = vmatprep.mubr.f32.mxu0 %v2380_v9 }
  0x17   :  { %1940 = vmatmul.mubr.f32.vlgmr.msra.gmra.mrb[0].mxu1 %v2382_v10 }
  0x18   :  { %1942 = vmatprep.mubr.f32.mxu1 %v2388_v14 }
  0x19   :  { %1964 = vmatmul.mubr.f32.vlgmr.msra.gmra.mrb[0].mxu0 %v2382_v10 }
  0x1a   :  { %1970 = vmatpush3.msra.mxu0 %v2378_v8  ;;  %1966 = vmatprep.mubr.f32.mxu0 %v2388_v14 }
  0x1b   :  { %1943 = vmatmul.mubr.f32.gmra.mrb[2].mxu1 %v2398_v20 }
  0x1c   :  { %1985 = vmatprep.mubr.f32.mxu1 %v766_v51 }
  0x1d   :  { %1967 = vmatmul.mubr.f32.gmra.mrb[2].mxu0 %v2398_v20 }
  0x1e   :  { %1971 = vmatprep.mubr.f32.mxu0 %v2380_v9 }
  0x21   :  { %1972 = vmatmul.mubr.f32.vlgmr.msra.gmra.mrb[0].mxu0 %v2382_v10  ;;  %v688_v10 = vsel %vm680_vm2, %v654_v3, 0 }
  0x22   :  { %1974 = vmatprep.mubr.f32.mxu0 %v2388_v14  ;;  %v2466_v14 = vand.u32 4294901760, %v688_v10 }
  0x24   :  { %v2475_v18 = vsub.f32 %v688_v10, %v2466_v14 }
  0x25   :  { %1975 = vmatmul.mubr.f32.gmra.mrb[2].mxu0 %v2398_v20 }
  0x26   :  { %v784_v26 = vand.u32 4294901760, %v2475_v18 }
  0x28   :  { %v785_v39 = vsub.f32 %v2475_v18, %v784_v26 }
  0x82   :  { %v49_v57 = vpop.permute.xlu1 %48 }
  0x83   :  { %v39_v54 = vpop.permute.xlu0 %38 }
  0x88   :  { %v44_v58 = vpop.permute.xlu0 %43 }
  0x8a   :  { %v54_v1 = vpop.permute.xlu1 %53 }
  0xea   :  { %v1941_v52 = vpop.f32.mrb[0].mxu1 }
  0xeb   :  { %v251_v53 = vpop.f32.mrb[1].mxu1  ;;  %v2211_v59 = vadd.f32 %v1941_v52, %v44_v58  ;;  %v795_v52 = vsub.f32 %v2479_v24, %v794_v36 }
  0xec   :  { %v2213_v60 = vadd.f32 %v251_v53, %v39_v54 }
  0xee   :  { %v1944_v55 = vpop.f32.mrb[2].mxu1 }
  0xef   :  { %v263_v56 = vpop.f32.mrb[3].mxu1  ;;  %v2215_v4 = vadd.f32 %v1944_v55, %v54_v1  ;;  %v786_v55 = vand.u32 4294901760, %v785_v39 }
  0xf0   :  { %v2217_v6 = vadd.f32 %v263_v56, %v49_v57 }
  0xf4   :  { %v1973_v61 = vpop.f32.mrb[0].mxu0 }
  0xf5   :  { %v2212_v63 = vadd.f32 %v2211_v59, %v1973_v61  ;;  %v626_v0 = vpop.f32.mrb[1].mxu0  ;;  %v796_v61 = vand.u32 4294901760, %v795_v52 }
  0xf6   :  { %v2214_v2 = vadd.f32 %v2213_v60, %v626_v0  ;;  %v663_v0 = vpop.permute.xlu0 %662 }
  0xf7   :  { %2276 = vtanh.f32 %v2212_v63 }
  0xf8   :  { %2278 = vtanh.f32 %v2214_v2  ;;  %v1976_v7 = vpop.f32.mrb[2].mxu0  ;;  %v1311_v2 = vld [vmem:[%s2571_s5] sm:$0x3]  ;;  %s2320_s5 = smov [#allocation2]  }
  0xf9   :  { %v2216_v8 = vadd.f32 %v2215_v4, %v1976_v7  ;;  %v638_v9 = vpop.f32.mrb[3].mxu0  ;;  %s1813_s9 = sshll.u32 %s2320_s5, 4  ;;  %s1814_s9 = int_to_ptr.vmem [resolvable:$true] %s1813_s9 }
  0xfa   :  { %v2218_v12 = vadd.f32 %v2217_v6, %v638_v9  ;;  %v1319_v6 = vsel %vm680_vm2, %v1311_v2, 0  ;;  %v673_v9 = vpop.permute.xlu0 %672  ;;  %s2292_s10 = scalar_lea.vmem %s1814_s9, 32  ;;  %p2297_p1 = scmp.lt.s32.totalorder %s1814_s9, %s1814_s9 }
  0xfb   :  { %2280 = vtanh.f32 %v2216_v8  ;;  %p2293_p0 = scmp.ne.s32.totalorder %s1814_s9, %s2292_s10  ;;  %p2298_p2 = scmp.lt.s32.totalorder %s2292_s10, %s2292_s10 }
  0xfc   :  { %2282 = vtanh.f32 %v2218_v12 }
  0xfd   :  { %p2299_p3 = por %p2298_p2, %p2297_p1 }
  0xff   :  { %p2300_p4 = pnand %p2299_p3, %p2293_p0 }
 0x101   :  { %v2277_v19 = vpop.eup %2276 }
 0x102   :  { %v2279_v20 = vpop.eup %2278  ;;  %v697_v21 = vand.u32 4294901760, %v2277_v19 }
 0x103   :  { %v694_v23 = vand.u32 4294901760, %v2279_v20 }
 0x104   :  { %v811_v25 = vsub.f32 %v2277_v19, %v697_v21 }
 0x105   :  { %v2281_v27 = vpop.eup %2280  ;;  %v2482_v28 = vpack.c.bf16 %v697_v21, %v694_v23  ;;  %v804_v29 = vsub.f32 %v2279_v20, %v694_v23 }
 0x106   :  { %v2283_v30 = vpop.eup %2282  ;;  %v703_v31 = vand.u32 4294901760, %v2281_v27  ;;  %v812_v33 = vand.u32 4294901760, %v811_v25 }
 0x107   :  { %v700_v34 = vand.u32 4294901760, %v2283_v30  ;;  %2128 = vmatprep.subr.bf16.mxu1 %v2482_v28  ;;  %v805_v35 = vand.u32 4294901760, %v804_v29  ;;  %v2143_v37 = vpack.c.bf16 %v811_v25, %v804_v29 }
 0x108   :  { %2130 = vmatpush3.bf16.msra.mxu1 %v2482_v28  ;;  %v813_v38 = vsub.f32 %v811_v25, %v812_v33  ;;  %v825_v40 = vsub.f32 %v2281_v27, %v703_v31 }
 0x109   :  { %v2131_v41 = vpack.c.bf16 %v703_v31, %v700_v34  ;;  %v806_v42 = vsub.f32 %v804_v29, %v805_v35  ;;  %v818_v43 = vsub.f32 %v2283_v30, %v700_v34  ;;  %v2159_v44 = vpack.c.bf16 %v812_v33, %v805_v35 }
 0x10a   :  { %v814_v46 = vand.u32 4294901760, %v813_v38  ;;  %v826_v50 = vand.u32 4294901760, %v825_v40 }
 0x10b   :  { %2132 = vmatprep.subr.bf16.mxu1 %v2131_v41  ;;  %v807_v51 = vand.u32 4294901760, %v806_v42  ;;  %v819_v53 = vand.u32 4294901760, %v818_v43  ;;  %v2147_v54 = vpack.c.bf16 %v825_v40, %v818_v43 }
 0x10c   :  { %2134 = vmatpush3.bf16.msra.mxu1 %v2131_v41  ;;  %v827_v56 = vsub.f32 %v825_v40, %v826_v50 }
 0x10d   :  { %v2135_v57 = vpack.c.bf16 %v814_v46, %v807_v51  ;;  %v820_v58 = vsub.f32 %v818_v43, %v819_v53  ;;  %v2163_v59 = vpack.c.bf16 %v826_v50, %v819_v53 }
 0x10e   :  { %v828_v60 = vand.u32 4294901760, %v827_v56 }
 0x10f   :  { %1986 = vmatmul.mubr.f32.vlgmr.msra.gmra.mrb[4].mxu1 %v776_v45  ;;  %2136 = vmatprep.subr.bf16.mxu1 %v2135_v57  ;;  %v821_v62 = vand.u32 4294901760, %v820_v58 }
 0x110   :  { %2138 = vmatpush3.bf16.msra.mxu1 %v2135_v57  ;;  %1988 = vmatprep.mubr.f32.mxu1 %v786_v55  ;;  %v1316_v55 = vpop.permute.xlu0 %1315 }
 0x111   :  { %v2139_v63 = vpack.c.bf16 %v828_v60, %v821_v62 }
 0x113   :  { %1989 = vmatmul.mubr.f32.gmra.mrb[6].mxu1 %v796_v61  ;;  %2140 = vmatprep.subr.bf16.mxu1 %v2139_v63 }
 0x114   :  { %2142 = vmatpush3.bf16.msra.mxu1 %v2139_v63  ;;  %1999 = vmatprep.mubr.f32.mxu1 %v2444_v47 }
 0x115   :  { %2144 = vmatprep.subr.bf16.mxu1 %v2143_v37 }
 0x117   :  { %2000 = vmatmul.mubr.f32.vlgmr.msra.gmra.mrb[4].mxu1 %v2464_v13 }
 0x118   :  { %2146 = vmatpush3.bf16.msra.mxu1 %v2143_v37  ;;  %2002 = vmatprep.mubr.f32.mxu1 %v2466_v14 }
 0x119   :  { %2148 = vmatprep.subr.bf16.mxu1 %v2147_v54 }
 0x11b   :  { %2003 = vmatmul.mubr.f32.gmra.mrb[6].mxu1 %v2472_v17 }
 0x11c   :  { %2150 = vmatpush3.bf16.msra.mxu1 %v2147_v54  ;;  %2013 = vmatprep.mubr.f32.mxu1 %v2447_v48  ;;  %v2317_v48 = vmov 0.0|0.0  }
 0x11d   :  { %2152 = vmatprep.subr.bf16.mxu1 %v2482_v28  ;;  %2181 = vmatprep.subr.bf16.mxu0 %v2317_v48 }
 0x11f   :  { %2014 = vmatmul.mubr.f32.vlgmr.msra.gmra.mrb[4].mxu1 %v2470_v16 }
 0x120   :  { %2154 = vmatpush3.bf16.msra.mxu1 %v2482_v28  ;;  %2016 = vmatprep.mubr.f32.mxu1 %v2475_v18 }
 0x121   :  { %2156 = vmatprep.subr.bf16.mxu1 %v2131_v41 }
 0x123   :  { %2017 = vmatmul.mubr.f32.gmra.mrb[6].mxu1 %v2479_v24 }
 0x124   :  { %2158 = vmatpush3.bf16.msra.mxu1 %v2131_v41  ;;  %2027 = vmatprep.mubr.f32.mxu1 %v764_v49  ;;  %v2319_v49 = vmov 0.0  }
 0x125   :  { %2160 = vmatprep.subr.bf16.mxu1 %v2159_v44  ;;  %2080 = vmatprep.mubr.msk.f32.mxu0 %vm2318_vm3, %v2319_v49 }
 0x127   :  { %2028 = vmatmul.mubr.f32.vlgmr.msra.gmra.mrb[4].mxu1 %v774_v22 }
 0x128   :  { %2162 = vmatpush3.bf16.msra.mxu1 %v2159_v44  ;;  %2030 = vmatprep.mubr.f32.mxu1 %v784_v26 }
 0x129   :  { %2164 = vmatprep.subr.bf16.mxu1 %v2163_v59 }
 0x12b   :  { %2031 = vmatmul.mubr.f32.gmra.mrb[6].mxu1 %v794_v36 }
 0x12c   :  { %2166 = vmatpush3.bf16.msra.mxu1 %v2163_v59  ;;  %2041 = vmatprep.mubr.f32.mxu1 %v2444_v47 }
 0x12d   :  { %2168 = vmatprep.subr.bf16.mxu1 %v2482_v28 }
 0x12f   :  { %2042 = vmatmul.mubr.f32.vlgmr.msra.gmra.mrb[4].mxu1 %v2464_v13 }
 0x130   :  { %2170 = vmatpush3.bf16.msra.mxu1 %v2482_v28  ;;  %2044 = vmatprep.mubr.f32.mxu1 %v2466_v14 }
 0x131   :  { %2172 = vmatprep.subr.bf16.mxu1 %v2131_v41 }
 0x133   :  { %2045 = vmatmul.mubr.f32.gmra.mrb[6].mxu1 %v2472_v17 }
 0x134   :  { %2174 = vmatpush3.bf16.msra.mxu1 %v2131_v41  ;;  %2055 = vmatprep.mubr.f32.mxu1 %v2444_v47  ;;  %v668_v47 = vpop.permute.xlu1 %667 }
 0x135   :  { %2175 = vmatprep.subr.bf16.mxu1 %v2317_v48 }
 0x137   :  { %2056 = vmatmul.mubr.f32.vlgmr.msra.gmra.mrb[4].mxu1 %v2464_v13  ;;  %v2530_v13 = vand.u32 4294901760, %v1319_v6 }
 0x138   :  { %2058 = vmatprep.mubr.f32.mxu1 %v2466_v14  ;;  %v678_v7 = vpop.permute.xlu1 %677 }
 0x139   :  { %v1391_v14 = vsub.f32 %v1319_v6, %v2530_v13 }
 0x13b   :  { %2059 = vmatmul.mubr.f32.gmra.mrb[6].mxu1 %v2472_v17  ;;  %v1392_v18 = vand.u32 4294901760, %v1391_v14 }
 0x13c   :  { %2069 = vmatprep.mubr.msk.f32.mxu1 %vm2318_vm3, %v2319_v49 }
 0x13d   :  { %v1393_v26 = vsub.f32 %v1391_v14, %v1392_v18 }
 0x13f   :  { %v1394_v37 = vand.u32 4294901760, %v1393_v26 }
 0x20a   :  { %v2057_v1 = vpop.f32.mrb[4].mxu1 }
 0x20b   :  { %v2219_v3 = vadd.f32 %v2057_v1, %v668_v47  ;;  %v1285_v4 = vpop.f32.mrb[5].mxu1 }
 0x20c   :  { %v2220_v5 = vadd.f32 %v1285_v4, %v663_v0 }
 0x20d   :  { %2284 = vtanh.f32 %v2219_v3 }
 0x20e   :  { %2286 = vtanh.f32 %v2220_v5  ;;  %v2060_v8 = vpop.f32.mrb[6].mxu1 }
 0x20f   :  { %v2221_v10 = vadd.f32 %v2060_v8, %v678_v7  ;;  %v1297_v11 = vpop.f32.mrb[7].mxu1 }
 0x210   :  { %v2222_v12 = vadd.f32 %v1297_v11, %v673_v9 }
 0x211   :  { %2288 = vtanh.f32 %v2221_v10 }
 0x212   :  { %2290 = vtanh.f32 %v2222_v12 }
 0x217   :  { %v2285_v15 = vpop.eup %2284 }
 0x218   :  { %v2287_v16 = vpop.eup %2286  ;;  %v1325_v17 = vand.u32 4294901760, %v2285_v15 }
 0x219   :  { %v1322_v19 = vand.u32 4294901760, %v2287_v16 }
 0x21a   :  { %v1409_v20 = vsub.f32 %v2285_v15, %v1325_v17 }
 0x21b   :  { %v2289_v21 = vpop.eup %2288  ;;  %v2176_v22 = vpack.c.bf16 %v1325_v17, %v1322_v19  ;;  %v1402_v23 = vsub.f32 %v2287_v16, %v1322_v19 }
 0x21c   :  { %v2291_v24 = vpop.eup %2290  ;;  %v1331_v25 = vand.u32 4294901760, %v2289_v21  ;;  %v1410_v27 = vand.u32 4294901760, %v1409_v20 }
 0x21d   :  { %2177 = vmatpush3.bf16.msra.mxu1 %v2176_v22  ;;  %v1328_v28 = vand.u32 4294901760, %v2291_v24  ;;  %v1403_v29 = vand.u32 4294901760, %v1402_v23  ;;  %v2188_v30 = vpack.c.bf16 %v1409_v20, %v1402_v23 }
 0x21e   :  { %2178 = vmatprep.subr.bf16.mxu1 %v2317_v48  ;;  %v1423_v31 = vsub.f32 %v2289_v21, %v1331_v25  ;;  %v1411_v32 = vsub.f32 %v1409_v20, %v1410_v27 }
 0x21f   :  { %v2179_v33 = vpack.c.bf16 %v1331_v25, %v1328_v28  ;;  %v1416_v34 = vsub.f32 %v2291_v24, %v1328_v28  ;;  %v1404_v35 = vsub.f32 %v1402_v23, %v1403_v29  ;;  %v2200_v36 = vpack.c.bf16 %v1410_v27, %v1403_v29 }
 0x220   :  { %v1412_v38 = vand.u32 4294901760, %v1411_v32  ;;  %v1424_v39 = vand.u32 4294901760, %v1423_v31 }
 0x221   :  { %2180 = vmatpush3.bf16.msra.mxu1 %v2179_v33  ;;  %v1405_v40 = vand.u32 4294901760, %v1404_v35  ;;  %v1417_v41 = vand.u32 4294901760, %v1416_v34  ;;  %v2191_v42 = vpack.c.bf16 %v1423_v31, %v1416_v34 }
 0x222   :  { %v1425_v43 = vsub.f32 %v1423_v31, %v1424_v39 }
 0x223   :  { %v2182_v44 = vpack.c.bf16 %v1412_v38, %v1405_v40  ;;  %v1418_v45 = vsub.f32 %v1416_v34, %v1417_v41  ;;  %v2203_v46 = vpack.c.bf16 %v1424_v39, %v1417_v41 }
 0x224   :  { %2070 = vmatmul.mubr.f32.vlgmr.msra.gmra.mrb[8].mxu1 %v1394_v37  ;;  %v1426_v50 = vand.u32 4294901760, %v1425_v43 }
 0x225   :  { %2183 = vmatpush3.bf16.msra.mxu0 %v2182_v44  ;;  %v1419_v51 = vand.u32 4294901760, %v1418_v45 }
 0x226   :  { %2184 = vmatprep.subr.bf16.mxu0 %v2317_v48 }
 0x227   :  { %v2185_v52 = vpack.c.bf16 %v1426_v50, %v1419_v51 }
 0x229   :  { %2186 = vmatpush3.bf16.msra.mxu0 %v2185_v52 }
 0x22a   :  { %2187 = vmatprep.subr.bf16.mxu0 %v2317_v48 }
 0x22c   :  { %2081 = vmatmul.mubr.f32.vlgmr.msra.gmra.mrb[4].mxu0 %v2530_v13 }
 0x22d   :  { %2189 = vmatpush3.bf16.msra.mxu0 %v2188_v30  ;;  %2091 = vmatprep.mubr.msk.f32.mxu0 %vm2318_vm3, %v2319_v49 }
 0x22e   :  { %2190 = vmatprep.subr.bf16.mxu0 %v2317_v48 }
 0x231   :  { %2192 = vmatpush3.bf16.msra.mxu0 %v2191_v42 }
 0x232   :  { %2193 = vmatprep.subr.bf16.mxu0 %v2317_v48 }
 0x234   :  { %2092 = vmatmul.mubr.f32.vlgmr.msra.gmra.mrb[4].mxu0 %v1391_v14 }
 0x235   :  { %2195 = vmatpush3.bf16.msra.mxu0 %v2176_v22  ;;  %2102 = vmatprep.mubr.msk.f32.mxu0 %vm2318_vm3, %v2319_v49 }
 0x236   :  { %2196 = vmatprep.subr.bf16.mxu0 %v2317_v48 }
 0x239   :  { %2198 = vmatpush3.bf16.msra.mxu0 %v2179_v33 }
 0x23a   :  { %2199 = vmatprep.subr.bf16.mxu0 %v2317_v48 }
 0x23c   :  { %2103 = vmatmul.mubr.f32.vlgmr.msra.gmra.mrb[4].mxu0 %v1392_v18 }
 0x23d   :  { %2201 = vmatpush3.bf16.msra.mxu0 %v2200_v36  ;;  %2113 = vmatprep.mubr.msk.f32.mxu0 %vm2318_vm3, %v2319_v49 }
 0x23e   :  { %2202 = vmatprep.subr.bf16.mxu0 %v2317_v48 }
 0x241   :  { %2204 = vmatpush3.bf16.msra.mxu0 %v2203_v46 }
 0x242   :  { %2205 = vmatprep.subr.bf16.mxu0 %v2317_v48 }
 0x244   :  { %2114 = vmatmul.mubr.f32.vlgmr.msra.gmra.mrb[4].mxu0 %v2530_v13 }
 0x245   :  { %2207 = vmatpush3.bf16.msra.mxu0 %v2176_v22  ;;  %2124 = vmatprep.mubr.msk.f32.mxu0 %vm2318_vm3, %v2319_v49 }
 0x246   :  { %2208 = vmatprep.subr.bf16.mxu0 %v2317_v48 }
 0x249   :  { %2210 = vmatpush3.bf16.msra.mxu0 %v2179_v33 }
 0x24c   :  { %2125 = vmatmul.mubr.f32.vlgmr.msra.gmra.mrb[4].mxu0 %v2530_v13 }
 0x2f7   :  { %v1396_v53 = vpop.f32.mrb[8].mxu1 }
 0x2f8   :  { %v2071_v54 = vpop.f32.mrb[9].mxu1  ;;  %v1397_v56 = vadd.f32 %v1396_v53, %v1316_v55 }
 0x31f   :  { %v1802_v57 = vpop.f32.mrb[4].mxu0 }
 0x320   :  { %v2224_v58 = vadd.f32 %v1802_v57, %v1397_v56  ;;  %v2126_v59 = vpop.f32.mrb[5].mxu0 }
 0x322   :  { %1806 = vst [vmem:[#allocation2] sm:$0x3] %v2224_v58 }
 0x323   :  { %2303 = shalt.err (!%p2300_p4)
}
 0x324   :  { %s2304_s12 = scalar_lea.hbm %s2573_s7, 32 }
 0x325   :  { %p2305_p5 = scmp.ne.s32.totalorder %s2573_s7, %s2304_s12  ;;  %p2308_p6 = scmp.lt.u32.totalorder %s2304_s12, %s2573_s7 }
 0x327   :  { %p2310_p7 = pnand %p2308_p6, %p2305_p5 }
 0x329   :  { %2313 = shalt.err (!%p2310_p7)
}
 0x32a   :  { %1816 = dma.vmem_to_hbm [thread:$0]  %s1814_s9, 32, %s2573_s7, [#allocation3]  }
 0x32b   :  { %2314 = dma.done.wait [#allocation3], 32  }
 0x32c   :  { %2315 = vsyncadd [#allocation3], 4294967264 }
 0x32d   :  { %1820 = vsyncpa [#allocation3], 1 }

</bundles_post_ra>
